<compile_context>
chip_gen: v5e
topology: v5e:2x2
jax: 0.10.0
libtpu: 0.0.40
codegen_flags: <defaults>
</compile_context>

<pallas_src>
import jax
import jax.numpy as jnp
from jax.experimental import pallas as pl
from jax.experimental.pallas import tpu as pltpu


def _round_up(x, m):
    return ((x + m - 1) // m) * m


# --------------------------- chip profile ------------------------------------

def _chip_profile():
    """VMEM sizing, tile granularity and dtype default gated on TPU generation."""
    kind = ""
    try:
        kind = jax.devices()[0].device_kind.lower()
    except Exception:
        pass
    gen = None
    for g in (7, 6, 5, 4, 3, 2):
        if (f"v{g}" in kind) or (f"tpu{g}" in kind):
            gen = g
            break

    vmem_cap = None
    try:  # preferred source when available
        info = pltpu.get_tpu_info()
        for name in ("vmem_capacity_bytes", "vmem_size_bytes", "vmem_bytes"):
            v = getattr(info, name, None)
            if isinstance(v, int) and v > 0:
                vmem_cap = v
                break
    except Exception:
        pass
    if vmem_cap is None:
        # v5e/v6e: 128 MiB per TC; v7x: 64 MiB.  Unknown -> conservative.
        vmem_cap = 128 * 1024 * 1024 if gen in (5, 6) else 64 * 1024 * 1024

    if vmem_cap >= 128 * 1024 * 1024:           # v5e / v6e
        vmem_limit = 64 * 1024 * 1024
        tile_budget = 48 * 1024 * 1024
    else:                                       # v7x or unknown
        vmem_limit = 32 * 1024 * 1024
        tile_budget = 24 * 1024 * 1024

    return dict(
        vmem_limit=vmem_limit,
        tile_budget=tile_budget,
        row_gran=128 if gen == 5 else 256,      # v5e MXU is 128-wide
        max_tile_n=128 if gen == 5 else 256,
        fast_bf16=(gen is not None and gen >= 6),
    )


# --------------------------- tile selection -----------------------------------

def _pick_tile_n(cout_pad, max_tile_n):
    if cout_pad <= max_tile_n:
        return cout_pad
    for t in (256, 128):
        if t <= max_tile_n and cout_pad % t == 0:
            return t
    return 128


def _pick_tile_k(kc_pad, tile_n, in_bytes, budget):
    """Largest multiple-of-128 divisor of kc_pad whose double-buffered weight
    block stays within ~1/3 of the VMEM budget (bounded at 4096)."""
    max_k = min(kc_pad, 4096)
    limit = max(budget // 3, 2 * 128 * tile_n * in_bytes)
    k = (max_k // 128) * 128
    while k > 128:
        if kc_pad % k == 0 and 2 * k * tile_n * in_bytes <= limit:
            return k
        k -= 128
    return 128


def _pick_tile_rows(rows, tile_k, tile_n, in_bytes, out_bytes, budget,
                    row_gran, with_acc):
    """Largest row tile (row_gran-aligned) whose *full* working set — x tile,
    output tile (both double-buffered), f32 accumulator, and the
    double-buffered weight + bias blocks — fits the VMEM budget."""
    if rows <= row_gran:
        return max(32, _round_up(rows, 32))     # 32 keeps bf16 sublane packing happy
    per_row = (2 * tile_k * in_bytes + 2 * tile_n * out_bytes
               + (4 * tile_n if with_acc else 0))
    fixed = 2 * tile_k * tile_n * in_bytes + 2 * tile_n * 4
    avail = max(budget - fixed, per_row * row_gran)
    t = (avail // per_row // row_gran) * row_gran
    t = max(t, row_gran)
    return min(t, 4096, _round_up(rows, row_gran))


# ------------------------------ kernels ---------------------------------------

def _conv_kernel(x_ref, w_ref, b_ref, o_ref):
    """Single-shot tile: (tile_rows, tile_k) @ (tile_k, tile_n) + bias."""
    acc = jnp.dot(x_ref[...], w_ref[...], preferred_element_type=jnp.float32)
    o_ref[...] = (acc + b_ref[...]).astype(o_ref.dtype)


def _conv_kernel_acc(x_ref, w_ref, b_ref, o_ref, acc_ref):
    """Kc-tiled reduction (innermost grid axis) with an f32 VMEM accumulator."""
    k = pl.program_id(2)

    @pl.when(k == 0)
    def _():
        acc_ref[...] = jnp.zeros_like(acc_ref)

    acc_ref[...] += jnp.dot(x_ref[...], w_ref[...],
                            preferred_element_type=jnp.float32)

    @pl.when(k == pl.num_programs(2) - 1)
    def _():
        o_ref[...] = (acc_ref[...] + b_ref[...]).astype(o_ref.dtype)


# ------------------------------ forward ---------------------------------------

def conv_layer_forward(x_nchw, weight_oihw, bias, *, kernel_size, stride,
                       compute_dtype=None, out_dtype=None, out_layout="NCHW",
                       tile_rows=None, tile_n=None, tile_k=None):
    """Equivalent of ConvLayer.forward: ReflectionPad2d(k//2) then Conv2d(k, stride).

    compute_dtype=None -> bfloat16 operands on v6e/v7x (f32 accumulation + f32
    bias add), float32 on v5e / unknown chips.  out_layout="NHWC" skips the
    final NCHW transpose (saves a full output HBM pass) for NHWC consumers.
    """
    K = kernel_size
    pad = K // 2
    N, Cin, H, W = x_nchw.shape
    Cout = weight_oihw.shape[0]
    out_dtype = out_dtype or x_nchw.dtype

    prof = _chip_profile()
    if compute_dtype is None:
        compute_dtype = jnp.bfloat16 if prof["fast_bf16"] else x_nchw.dtype

    Hp, Wp = H + 2 * pad, W + 2 * pad
    Hout = (Hp - K) // stride + 1
    Wout = (Wp - K) // stride + 1

    # ---- wrapper glue: reflection pad + NHWC + im2col (taps -> channels) ----
    # Cast first so every wrapper pass moves compute_dtype bytes (bf16 halves
    # the im2col HBM traffic on v6e/v7x).
    x = x_nchw.astype(compute_dtype)
    x_pad = jnp.pad(x, ((0, 0), (0, 0), (pad, pad), (pad, pad)), mode="reflect")
    x_nhwc = jnp.transpose(x_pad, (0, 2, 3, 1))                 # (N, Hp, Wp, Cin)

    patches = []
    for kh in range(K):
        for kw in range(K):
            patches.append(
                x_nhwc[:, kh:kh + (Hout - 1) * stride + 1:stride,
                          kw:kw + (Wout - 1) * stride + 1:stride, :])
    x_col = jnp.concatenate(patches, axis=-1)                   # (N,Hout,Wout,K*K*Cin)

    Kc = K * K * Cin
    rows = N * Hout * Wout
    Kc_pad = _round_up(Kc, 128)        # lane-dense contraction dim
    Cout_pad = _round_up(Cout, 128)    # lane-dense output (full-lane vst)

    in_bytes = jnp.dtype(compute_dtype).itemsize
    out_bytes = jnp.dtype(out_dtype).itemsize

    if tile_n is None:
        tile_n = _pick_tile_n(Cout_pad, prof["max_tile_n"])
    if tile_k is None:
        tile_k = _pick_tile_k(Kc_pad, tile_n, in_bytes, prof["tile_budget"])
    assert Cout_pad % tile_n == 0 and tile_n % 128 == 0
    assert Kc_pad % tile_k == 0 and tile_k % 128 == 0
    with_acc = (Kc_pad // tile_k) > 1
    if tile_rows is None:
        tile_rows = _pick_tile_rows(rows, tile_k, tile_n, in_bytes, out_bytes,
                                    prof["tile_budget"], prof["row_gran"],
                                    with_acc)
    assert tile_rows % 8 == 0
    rows_pad = _round_up(rows, tile_rows)

    x_col = x_col.reshape(rows, Kc)
    x_col = jnp.pad(x_col, ((0, rows_pad - rows), (0, Kc_pad - Kc)))

    # (Cout,Cin,K,K) -> (K,K,Cin,Cout) -> (Kc,Cout); row order (kh,kw,cin)
    # matches the tap concatenation order used for the patches above.
    w_col = jnp.transpose(weight_oihw, (2, 3, 1, 0)).reshape(Kc, Cout)
    w_col = jnp.pad(w_col, ((0, Kc_pad - Kc), (0, Cout_pad - Cout)))
    w_col = w_col.astype(compute_dtype)
    b_col = jnp.pad(bias.astype(jnp.float32),
                    (0, Cout_pad - Cout)).reshape(1, Cout_pad)

    grid = (rows_pad // tile_rows, Cout_pad // tile_n, Kc_pad // tile_k)
    n_i, n_j, _ = grid

    cost = pl.CostEstimate(
        flops=2 * rows_pad * Kc_pad * Cout_pad,
        transcendentals=0,
        bytes_accessed=(n_j * rows_pad * Kc_pad * in_bytes      # x re-read per Cout tile
                        + n_i * Kc_pad * Cout_pad * in_bytes    # w re-read per row tile
                        + Cout_pad * 4
                        + rows_pad * Cout_pad * out_bytes),
    )

    in_specs = [
        pl.BlockSpec((tile_rows, tile_k), lambda i, j, k: (i, k)),   # patches
        pl.BlockSpec((tile_k, tile_n), lambda i, j, k: (k, j)),      # weights
        pl.BlockSpec((1, tile_n), lambda i, j, k: (0, j)),           # bias (f32)
    ]
    out_spec = pl.BlockSpec((tile_rows, tile_n), lambda i, j, k: (i, j))

    kernel = _conv_kernel_acc if with_acc else _conv_kernel
    scratch = [pltpu.VMEM((tile_rows, tile_n), jnp.float32)] if with_acc else []

    out_flat = pl.pallas_call(
        kernel,
        out_shape=jax.ShapeDtypeStruct((rows_pad, Cout_pad), out_dtype),
        grid=grid,
        in_specs=in_specs,
        out_specs=out_spec,
        scratch_shapes=scratch,
        compiler_params=pltpu.CompilerParams(
            dimension_semantics=("parallel", "parallel", "arbitrary"),
            vmem_limit_bytes=prof["vmem_limit"],
        ),
        cost_estimate=cost,
    )(x_col, w_col, b_col)

    out = out_flat[:rows, :Cout].reshape(N, Hout, Wout, Cout)
    if out_layout == "NHWC":
        return out
    return jnp.transpose(out, (0, 3, 1, 2))                      # back to NCHW


# ------------------------------ tests ------------------------------------------

if __name__ == "__main__":
    key = jax.random.PRNGKey(0)

    def make_params(k, cin, cout, ksz):
        kw_, kb_ = jax.random.split(k)
        fan_in = cin * ksz * ksz
        bound = 1.0 / (fan_in ** 0.5)
        w = jax.random.uniform(kw_, (cout, cin, ksz, ksz),
                               minval=-bound, maxval=bound, dtype=jnp.float32)
        b = jax.random.uniform(kb_, (cout,),
                               minval=-bound, maxval=bound, dtype=jnp.float32)
        return w, b

    def reference(x, w, b, ksz, stride):
        p = ksz // 2
        xp = jnp.pad(x, ((0, 0), (0, 0), (p, p), (p, p)), mode="reflect")
        out = jax.lax.conv_general_dilated(
            xp, w, window_strides=(stride, stride), padding="VALID",
            dimension_numbers=("NCHW", "OIHW", "NCHW"))
        return out + b.reshape(1, -1, 1, 1)

    # --- Test 1: ConvLayer(4 -> 8, k=3, stride=2), f32, tight tolerance -------
    k1, k2, k3 = jax.random.split(key, 3)
    N, Cin, H, W, Cout, K, S = 2, 4, 16, 16, 8, 3, 2
    x = jax.random.normal(k1, (N, Cin, H, W), dtype=jnp.float32)
    w, b = make_params(k2, Cin, Cout, K)

    out = jax.block_until_ready(
        conv_layer_forward(x, w, b, kernel_size=K, stride=S,
                           compute_dtype=jnp.float32))
    ref = reference(x, w, b, K, S)
    assert out.shape == ref.shape == (N, Cout, 8, 8)
    assert jnp.allclose(out, ref, atol=5e-5, rtol=5e-5), \
        float(jnp.max(jnp.abs(out - ref)))

    # --- Test 2: stride=1, larger spatial; also check NHWC output path --------
    N2, Cin2, H2, W2, Cout2, K2, S2 = 2, 3, 32, 32, 16, 3, 1
    x2 = jax.random.normal(k3, (N2, Cin2, H2, W2), dtype=jnp.float32)
    w2, b2 = make_params(jax.random.fold_in(key, 7), Cin2, Cout2, K2)
    out2 = jax.block_until_ready(
        conv_layer_forward(x2, w2, b2, kernel_size=K2, stride=S2,
                           compute_dtype=jnp.float32))
    ref2 = reference(x2, w2, b2, K2, S2)
    assert out2.shape == ref2.shape == (N2, Cout2, H2, W2)
    assert jnp.allclose(out2, ref2, atol=5e-5, rtol=5e-5), \
        float(jnp.max(jnp.abs(out2 - ref2)))

    out2_nhwc = jax.block_until_ready(
        conv_layer_forward(x2, w2, b2, kernel_size=K2, stride=S2,
                           compute_dtype=jnp.float32, out_layout="NHWC"))
    assert jnp.allclose(out2_nhwc, jnp.transpose(ref2, (0, 2, 3, 1)),
                        atol=5e-5, rtol=5e-5)

    # --- Test 3: auto dtype (bf16 operands on v6e/v7x, f32 elsewhere) ---------
    out_auto = jax.block_until_ready(
        conv_layer_forward(x, w, b, kernel_size=K, stride=S))
    assert jnp.allclose(out_auto, ref, atol=3e-2, rtol=3e-2), \
        float(jnp.max(jnp.abs(out_auto - ref)))

    # --- Test 4: force Cout grid axis + Kc reduction axis (accumulator path) --
    N4, Cin4, H4, W4, Cout4, K4, S4 = 1, 32, 8, 8, 256, 3, 1
    x4 = jax.random.normal(jax.random.fold_in(key, 11),
                           (N4, Cin4, H4, W4), dtype=jnp.float32)
    w4, b4 = make_params(jax.random.fold_in(key, 13), Cin4, Cout4, K4)
    out4 = jax.block_until_ready(
        conv_layer_forward(x4, w4, b4, kernel_size=K4, stride=S4,
                           compute_dtype=jnp.float32,
                           tile_n=128, tile_k=128))      # grid = (1, 2, 3)
    ref4 = reference(x4, w4, b4, K4, S4)
    assert out4.shape == ref4.shape == (N4, Cout4, H4, W4)
    assert jnp.allclose(out4, ref4, atol=1e-4, rtol=1e-4), \
        float(jnp.max(jnp.abs(out4 - ref4)))

    print("KERNEL_OK")
</pallas_src>

<mosaic_0001>
module attributes {stable_mosaic.version = 11 : i64} {
  func.func @_conv_kernel(%arg0: i32, %arg1: i32, %arg2: i32, %arg3: memref<128x128xf32, #tpu.memory_space<vmem>>, %arg4: memref<128x128xf32, #tpu.memory_space<vmem>>, %arg5: memref<1x128xf32, #tpu.memory_space<vmem>>, %arg6: memref<128x128xf32, #tpu.memory_space<vmem>>) attributes {dimension_semantics = [#tpu.dimension_semantics<parallel>, #tpu.dimension_semantics<parallel>, #tpu.dimension_semantics<arbitrary>], iteration_bounds = array<i64: 1, 1, 1>, scalar_prefetch = 0 : i64, scratch_operands = 0 : i64, tpu.core_type = #tpu.core_type<tc>, window_params = [{transform_indices = @transform_0, window_bounds = array<i64: 128, 128>}, {transform_indices = @transform_1, window_bounds = array<i64: 128, 128>}, {transform_indices = @transform_2, window_bounds = array<i64: 1, 128>}, {transform_indices = @transform_3, window_bounds = array<i64: 128, 128>}]} {
    %c0 = arith.constant 0 : index
    %c0_0 = arith.constant 0 : index
    %0 = vector.load %arg3[%c0, %c0_0] : memref<128x128xf32, #tpu.memory_space<vmem>>, vector<128x128xf32>
    %c0_1 = arith.constant 0 : index
    %c0_2 = arith.constant 0 : index
    %1 = vector.load %arg4[%c0_1, %c0_2] : memref<128x128xf32, #tpu.memory_space<vmem>>, vector<128x128xf32>
    %cst = arith.constant dense<0.000000e+00> : vector<128x128xf32>
    %2 = tpu.matmul %0, %1, %cst {dimension_numbers = #tpu.dot_dimension_numbers<[1], [0], [0], [1], [0, 0, 1, 1], [], []>} : vector<128x128xf32>, vector<128x128xf32>, vector<128x128xf32> -> vector<128x128xf32>
    %c0_3 = arith.constant 0 : index
    %c0_4 = arith.constant 0 : index
    %3 = vector.load %arg5[%c0_3, %c0_4] : memref<1x128xf32, #tpu.memory_space<vmem>>, vector<1x128xf32>
    %4 = vector.broadcast %3 : vector<1x128xf32> to vector<128x128xf32>
    %5 = arith.addf %2, %4 : vector<128x128xf32>
    %c0_5 = arith.constant 0 : index
    %c0_6 = arith.constant 0 : index
    %6 = vector.load %arg6[%c0_5, %c0_6] : memref<128x128xf32, #tpu.memory_space<vmem>>, vector<128x128xf32>
    tpu.vector_store %arg6[%c0_5, %c0_6], %5 {strides = array<i32>} : memref<128x128xf32, #tpu.memory_space<vmem>>, vector<128x128xf32>,
    return
  }
  func.func @transform_0(%arg0: i32, %arg1: i32, %arg2: i32) -> (i32, i32) {
    %c0_i32 = arith.constant 0 : i32
    return %arg0, %arg2 : i32, i32
  }
  func.func @transform_1(%arg0: i32, %arg1: i32, %arg2: i32) -> (i32, i32) {
    %c0_i32 = arith.constant 0 : i32
    return %arg2, %arg1 : i32, i32
  }
  func.func @transform_2(%arg0: i32, %arg1: i32, %arg2: i32) -> (i32, i32) {
    %c0_i32 = arith.constant 0 : i32
    %c0_i32_0 = arith.constant 0 : i32
    return %c0_i32, %arg1 : i32, i32
  }
  func.func @transform_3(%arg0: i32, %arg1: i32, %arg2: i32) -> (i32, i32) {
    %c0_i32 = arith.constant 0 : i32
    return %arg0, %arg1 : i32, i32
  }
}

</mosaic_0001>

<bundles_post_ra>
// kernel: tpu_custom_call.1
= control target key start
LH: loop header
LB: loop body
LE: loop exit
PB: predicated region body
PF: predicated region fallthrough
CT: control target
= control target key end

     0   :  { %8 = vsyncpa [#allocation3], 0  ;;  %s362_s0 = inlined_call_operand.hbm [shape: f32[128,128], index: 0, kind: input, shape index: {}]   ;;  %s363_s1 = inlined_call_operand.hbm [shape: f32[128,128], index: 1, kind: input, shape index: {}]   ;;  %s364_s2 = inlined_call_operand.vmem [shape: f32[1,128], index: 2, kind: input, shape index: {}]   ;;  %s365_s3 = inlined_call_operand.hbm [shape: f32[128,128], index: 3, kind: output, shape index: {}]  }
   0x1   :  { %9 = vsyncpa [#allocation6], 0 }
   0x2   :  { %10 = vsyncpa [#allocation4], 0  ;;  %s15_s14 = sshll.u32 %s362_s0, 4  ;;  %s316_s15 = smov [#allocation2]   ;;  %s16_s14 = int_to_ptr.hbm [resolvable:$true] %s15_s14 }
   0x3   :  { %s17_s16 = sshll.u32 %s316_s15, 4  ;;  %s28_s19 = sshll.u32 %s363_s1, 4  ;;  %s18_s16 = int_to_ptr.vmem [resolvable:$true] %s17_s16  ;;  %s29_s19 = int_to_ptr.hbm [resolvable:$true] %s28_s19 }
   0x4   :  { %s317_s20 = smov 128   ;;  %s318_s21 = smov 8  }
   0x5   :  { %23 = dma.hbm_to_vmem [thread:$0]  %s16_s14, 2048, %s18_s16, [#allocation3], %s317_s20, %s317_s20, %s318_s21  }
   0x6   :  { %s319_s22 = smov [#allocation5]  }
   0x7   :  { %s30_s23 = sshll.u32 %s319_s22, 4  ;;  %s31_s23 = int_to_ptr.vmem [resolvable:$true] %s30_s23 }
   0x8   :  { %36 = dma.hbm_to_vmem [thread:$0]  %s29_s19, 2048, %s31_s23, [#allocation6], %s317_s20, %s317_s20, %s318_s21  }
   0x9   :  { %310 = dma.done.wait [#allocation3], 2048  }
   0xa   :  { %311 = vsyncadd [#allocation3], 4294965248 }
   0xb   :  { %312 = dma.done.wait [#allocation6], 2048  }
   0xc   :  { %313 = vsyncadd [#allocation6], 4294965248  ;;  %v78_v0 = vld [vmem:[#allocation5 + $0x78] sm:$0xff]  ;;  %v77_v1 = vld [vmem:[#allocation5 + $0x70] sm:$0xff]  ;;  %s170_s27 = sshll.u32 %s365_s3, 4  ;;  %s171_s27 = int_to_ptr.hbm [resolvable:$true] %s170_s27 }
   0xd   :  { %185 = vmatpush.msra.mxu2 %v78_v0  ;;  %186 = vmatpush.msra.mxu3 %v78_v0  ;;  %v76_v2 = vld [vmem:[#allocation5 + $0x68] sm:$0xff]  ;;  %v75_v3 = vld [vmem:[#allocation5 + $0x60] sm:$0xff]  ;;  %v74_v4 = vld [vmem:[#allocation5 + $0x58] sm:$0xff] }
   0xe   :  { %83 = vmatpush.msra.mxu0 %v78_v0  ;;  %184 = vmatpush.msra.mxu1 %v78_v0  ;;  %v73_v5 = vld [vmem:[#allocation5 + $0x50] sm:$0xff]  ;;  %v72_v6 = vld [vmem:[#allocation5 + $0x48] sm:$0xff]  ;;  %v71_v7 = vld [vmem:[#allocation5 + $0x40] sm:$0xff] }
   0xf   :  { %188 = vmatpush.msra.mxu2 %v77_v1  ;;  %189 = vmatpush.msra.mxu3 %v77_v1  ;;  %v70_v8 = vld [vmem:[#allocation5 + $0x38] sm:$0xff]  ;;  %v69_v9 = vld [vmem:[#allocation5 + $0x30] sm:$0xff]  ;;  %v68_v10 = vld [vmem:[#allocation5 + $0x28] sm:$0xff] }
  0x10   :  { %84 = vmatpush.msra.mxu0 %v77_v1  ;;  %187 = vmatpush.msra.mxu1 %v77_v1  ;;  %v67_v11 = vld [vmem:[#allocation5 + $0x20] sm:$0xff]  ;;  %v66_v12 = vld [vmem:[#allocation5 + $0x18] sm:$0xff]  ;;  %v65_v13 = vld [vmem:[#allocation5 + $0x10] sm:$0xff] }
  0x11   :  { %191 = vmatpush.msra.mxu2 %v76_v2  ;;  %192 = vmatpush.msra.mxu3 %v76_v2  ;;  %v64_v14 = vld [vmem:[#allocation5 + $0x8] sm:$0xff]  ;;  %v63_v15 = vld [vmem:[#allocation5] sm:$0xff]  ;;  %v57_v24 = vld [vmem:[#allocation2 + $0x50] sm:$0xff] }
  0x12   :  { %85 = vmatpush.msra.mxu0 %v76_v2  ;;  %190 = vmatpush.msra.mxu1 %v76_v2  ;;  %v55_v16 = vld [vmem:[#allocation2 + $0x40] sm:$0xff]  ;;  %v56_v20 = vld [vmem:[#allocation2 + $0x48] sm:$0xff]  ;;  %v61_v25 = vld [vmem:[#allocation2 + $0x70] sm:$0xff] }
  0x13   :  { %194 = vmatpush.msra.mxu2 %v75_v3  ;;  %195 = vmatpush.msra.mxu3 %v75_v3  ;;  %v59_v17 = vld [vmem:[#allocation2 + $0x60] sm:$0xff]  ;;  %v60_v21 = vld [vmem:[#allocation2 + $0x68] sm:$0xff]  ;;  %v49_v26 = vld [vmem:[#allocation2 + $0x10] sm:$0xff] }
  0x14   :  { %86 = vmatpush.msra.mxu0 %v75_v3  ;;  %193 = vmatpush.msra.mxu1 %v75_v3  ;;  %v47_v18 = vld [vmem:[#allocation2] sm:$0xff]  ;;  %v48_v22 = vld [vmem:[#allocation2 + $0x8] sm:$0xff]  ;;  %v53_v27 = vld [vmem:[#allocation2 + $0x30] sm:$0xff] }
  0x15   :  { %197 = vmatpush.msra.mxu2 %v74_v4  ;;  %198 = vmatpush.msra.mxu3 %v74_v4  ;;  %v51_v19 = vld [vmem:[#allocation2 + $0x20] sm:$0xff]  ;;  %v52_v23 = vld [vmem:[#allocation2 + $0x28] sm:$0xff]  ;;  %v58_v28 = vld [vmem:[#allocation2 + $0x58] sm:$0xff] }
  0x16   :  { %87 = vmatpush.msra.mxu0 %v74_v4  ;;  %196 = vmatpush.msra.mxu1 %v74_v4  ;;  %v62_v29 = vld [vmem:[#allocation2 + $0x78] sm:$0xff]  ;;  %v237_v32 = vld [vmem:[%s364_s2] ss:$0 sm:$0xff]  ;;  %s320_s2 = smov [#allocation7]  }
  0x17   :  { %200 = vmatpush.msra.mxu2 %v73_v5  ;;  %201 = vmatpush.msra.mxu3 %v73_v5  ;;  %v50_v30 = vld [vmem:[#allocation2 + $0x18] sm:$0xff]  ;;  %s168_s24 = sshll.u32 %s320_s2, 4  ;;  %s169_s24 = int_to_ptr.vmem [resolvable:$true] %s168_s24 }
  0x18   :  { %88 = vmatpush.msra.mxu0 %v73_v5  ;;  %199 = vmatpush.msra.mxu1 %v73_v5  ;;  %v54_v31 = vld [vmem:[#allocation2 + $0x38] sm:$0xff] }
  0x19   :  { %203 = vmatpush.msra.mxu2 %v72_v6  ;;  %204 = vmatpush.msra.mxu3 %v72_v6 }
  0x1a   :  { %89 = vmatpush.msra.mxu0 %v72_v6  ;;  %202 = vmatpush.msra.mxu1 %v72_v6 }
  0x1b   :  { %206 = vmatpush.msra.mxu2 %v71_v7  ;;  %207 = vmatpush.msra.mxu3 %v71_v7 }
  0x1c   :  { %90 = vmatpush.msra.mxu0 %v71_v7  ;;  %205 = vmatpush.msra.mxu1 %v71_v7 }
  0x1d   :  { %209 = vmatpush.msra.mxu2 %v70_v8  ;;  %210 = vmatpush.msra.mxu3 %v70_v8 }
  0x1e   :  { %91 = vmatpush.msra.mxu0 %v70_v8  ;;  %208 = vmatpush.msra.mxu1 %v70_v8 }
  0x1f   :  { %212 = vmatpush.msra.mxu2 %v69_v9  ;;  %213 = vmatpush.msra.mxu3 %v69_v9 }
  0x20   :  { %92 = vmatpush.msra.mxu0 %v69_v9  ;;  %211 = vmatpush.msra.mxu1 %v69_v9 }
  0x21   :  { %215 = vmatpush.msra.mxu2 %v68_v10  ;;  %216 = vmatpush.msra.mxu3 %v68_v10 }
  0x22   :  { %93 = vmatpush.msra.mxu0 %v68_v10  ;;  %214 = vmatpush.msra.mxu1 %v68_v10 }
  0x23   :  { %218 = vmatpush.msra.mxu2 %v67_v11  ;;  %219 = vmatpush.msra.mxu3 %v67_v11 }
  0x24   :  { %94 = vmatpush.msra.mxu0 %v67_v11  ;;  %217 = vmatpush.msra.mxu1 %v67_v11 }
  0x25   :  { %221 = vmatpush.msra.mxu2 %v66_v12  ;;  %222 = vmatpush.msra.mxu3 %v66_v12 }
  0x26   :  { %95 = vmatpush.msra.mxu0 %v66_v12  ;;  %220 = vmatpush.msra.mxu1 %v66_v12 }
  0x27   :  { %224 = vmatpush.msra.mxu2 %v65_v13  ;;  %225 = vmatpush.msra.mxu3 %v65_v13 }
  0x28   :  { %96 = vmatpush.msra.mxu0 %v65_v13  ;;  %223 = vmatpush.msra.mxu1 %v65_v13 }
  0x29   :  { %227 = vmatpush.msra.mxu2 %v64_v14  ;;  %228 = vmatpush.msra.mxu3 %v64_v14 }
  0x2a   :  { %97 = vmatpush.msra.mxu0 %v64_v14  ;;  %226 = vmatpush.msra.mxu1 %v64_v14 }
  0x2b   :  { %230 = vmatpush.msra.mxu2 %v63_v15  ;;  %231 = vmatpush.msra.mxu3 %v63_v15 }
  0x2c   :  { %123 = vmatmul.f32.vlgmr.msra.gmra.mxu2 %v55_v16  ;;  %135 = vmatmul.f32.vlgmr.msra.gmra.mxu3 %v59_v17 }
  0x2d   :  { %98 = vmatpush.msra.mxu0 %v63_v15  ;;  %229 = vmatpush.msra.mxu1 %v63_v15 }
  0x2e   :  { %99 = vmatmul.f32.vlgmr.msra.gmra.mxu0 %v47_v18  ;;  %111 = vmatmul.f32.vlgmr.msra.gmra.mxu1 %v51_v19 }
  0x34   :  { %126 = vmatmul.f32.gmra.mxu2 %v56_v20  ;;  %138 = vmatmul.f32.gmra.mxu3 %v60_v21 }
  0x36   :  { %102 = vmatmul.f32.gmra.mxu0 %v48_v22  ;;  %114 = vmatmul.f32.gmra.mxu1 %v52_v23 }
  0x3c   :  { %129 = vmatmul.f32.gmra.mxu2 %v57_v24  ;;  %141 = vmatmul.f32.gmra.mxu3 %v61_v25 }
  0x3e   :  { %105 = vmatmul.f32.gmra.mxu0 %v49_v26  ;;  %117 = vmatmul.f32.gmra.mxu1 %v53_v27 }
  0x44   :  { %132 = vmatmul.f32.gmra.mxu2 %v58_v28  ;;  %144 = vmatmul.f32.gmra.mxu3 %v62_v29 }
  0x46   :  { %108 = vmatmul.f32.gmra.mxu0 %v50_v30  ;;  %120 = vmatmul.f32.gmra.mxu1 %v54_v31 }
  0xab   :  { %v100_v33 = vpop.f32.mrf.mxu0  ;;  %v112_v34 = vpop.f32.mrf.mxu1 }
  0xac   :  { %v101_v35 = vadd.f32 %v237_v32, %v100_v33  ;;  %v113_v36 = vadd.f32 %v237_v32, %v112_v34 }
  0xae   :  { %148 = vst [vmem:[#allocation7] sm:$0xff] %v101_v35 }
  0xaf   :  { %152 = vst [vmem:[#allocation7 + $0x20] sm:$0xff] %v113_v36  ;;  %v124_v37 = vpop.f32.mrf.mxu2  ;;  %v136_v38 = vpop.f32.mrf.mxu3 }
  0xb0   :  { %v125_v39 = vadd.f32 %v237_v32, %v124_v37  ;;  %v137_v40 = vadd.f32 %v237_v32, %v136_v38 }
  0xb2   :  { %156 = vst [vmem:[#allocation7 + $0x40] sm:$0xff] %v125_v39 }
  0xb3   :  { %160 = vst [vmem:[#allocation7 + $0x60] sm:$0xff] %v137_v40  ;;  %v103_v41 = vpop.f32.mrf.mxu0  ;;  %v115_v42 = vpop.f32.mrf.mxu1 }
  0xb4   :  { %v104_v43 = vadd.f32 %v237_v32, %v103_v41  ;;  %v116_v44 = vadd.f32 %v237_v32, %v115_v42 }
  0xb6   :  { %149 = vst [vmem:[#allocation7 + $0x8] sm:$0xff] %v104_v43 }
  0xb7   :  { %153 = vst [vmem:[#allocation7 + $0x28] sm:$0xff] %v116_v44  ;;  %v127_v45 = vpop.f32.mrf.mxu2  ;;  %v139_v46 = vpop.f32.mrf.mxu3 }
  0xb8   :  { %v128_v47 = vadd.f32 %v237_v32, %v127_v45  ;;  %v140_v48 = vadd.f32 %v237_v32, %v139_v46 }
  0xba   :  { %157 = vst [vmem:[#allocation7 + $0x48] sm:$0xff] %v128_v47 }
  0xbb   :  { %161 = vst [vmem:[#allocation7 + $0x68] sm:$0xff] %v140_v48  ;;  %v106_v49 = vpop.f32.mrf.mxu0  ;;  %v118_v50 = vpop.f32.mrf.mxu1 }
  0xbc   :  { %v107_v51 = vadd.f32 %v237_v32, %v106_v49  ;;  %v119_v52 = vadd.f32 %v237_v32, %v118_v50 }
  0xbe   :  { %150 = vst [vmem:[#allocation7 + $0x10] sm:$0xff] %v107_v51 }
  0xbf   :  { %154 = vst [vmem:[#allocation7 + $0x30] sm:$0xff] %v119_v52  ;;  %v130_v53 = vpop.f32.mrf.mxu2  ;;  %v142_v54 = vpop.f32.mrf.mxu3 }
  0xc0   :  { %v131_v55 = vadd.f32 %v237_v32, %v130_v53  ;;  %v143_v56 = vadd.f32 %v237_v32, %v142_v54 }
  0xc2   :  { %158 = vst [vmem:[#allocation7 + $0x50] sm:$0xff] %v131_v55 }
  0xc3   :  { %162 = vst [vmem:[#allocation7 + $0x70] sm:$0xff] %v143_v56  ;;  %v109_v57 = vpop.f32.mrf.mxu0  ;;  %v121_v58 = vpop.f32.mrf.mxu1 }
  0xc4   :  { %v110_v59 = vadd.f32 %v237_v32, %v109_v57  ;;  %v122_v60 = vadd.f32 %v237_v32, %v121_v58 }
  0xc6   :  { %151 = vst [vmem:[#allocation7 + $0x18] sm:$0xff] %v110_v59 }
  0xc7   :  { %155 = vst [vmem:[#allocation7 + $0x38] sm:$0xff] %v122_v60  ;;  %v133_v61 = vpop.f32.mrf.mxu2  ;;  %v145_v62 = vpop.f32.mrf.mxu3 }
  0xc8   :  { %v134_v63 = vadd.f32 %v237_v32, %v133_v61  ;;  %v146_v0 = vadd.f32 %v237_v32, %v145_v62 }
  0xca   :  { %159 = vst [vmem:[#allocation7 + $0x58] sm:$0xff] %v134_v63 }
  0xcb   :  { %163 = vst [vmem:[#allocation7 + $0x78] sm:$0xff] %v146_v0 }
  0xcc   :  { %176 = dma.vmem_to_hbm [thread:$0]  %s169_s24, 2048, %s171_s27, [#allocation4], %s317_s20, %s317_s20, %s318_s21  }
  0xcd   :  { %314 = dma.done.wait [#allocation4], 2048  }
  0xce   :  { %315 = vsyncadd [#allocation4], 4294965248 }
  0xcf   :  { %181 = vsyncpa [#allocation3], 1 }
  0xd0   :  { %182 = vsyncpa [#allocation6], 1 }
  0xd1   :  { %183 = vsyncpa [#allocation4], 1 }

</bundles_post_ra>
